<compile_context>
chip_gen: v6e
topology: v6e:2x2x1
jax: 0.10.0
libtpu: 0.0.40
codegen_flags: <defaults>
</compile_context>

<pallas_src>
import jax
import jax.numpy as jnp
from jax import lax
from jax.experimental import pallas as pl
from jax.experimental.pallas import tpu as pltpu


def _pair_score_kernel(v_ref, l_ref, w_ref, Wt_ref, consts_ref, out_ref):
    # Per-grid-step shapes:
    #   v_ref      : (BB, N, D)
    #   l_ref      : (BB, N)
    #   w_ref      : (BB, WS)
    #   Wt_ref     : (2D, WS)   -- VMEM-resident across the grid
    #   consts_ref : (3, WS)    -- rows: [W_bias ; fc_weight ; fc_bias(bcast)]
    #   out_ref    : (BB, N)
    BB = v_ref.shape[0]
    N = v_ref.shape[1]
    D = v_ref.shape[2]
    WS = w_ref.shape[1]

    v = v_ref[...]                         # (BB, N, D)
    logits = l_ref[...]                    # (BB, N)
    w = w_ref[...]                         # (BB, WS)

    consts = consts_ref[...]               # (3, WS)
    Wb = consts[0:1, :]                    # (1, WS)
    fcw = consts[1:2, :]                   # (1, WS) -> broadcasts as (1,1,WS)
    fcb = consts[2:3, 0:1]                 # (1, 1)

    # --- softmax over the num_bbox axis, per problem (row-wise) ---
    m = jnp.max(logits, axis=1, keepdims=True)           # (BB, 1)
    e = jnp.exp(logits - m)                               # (BB, N)
    denom = jnp.sum(e, axis=1, keepdims=True)             # (BB, 1)
    s = e * pl.reciprocal(denom, approx=False)            # (BB, N)

    # --- v_2 = s @ v as VPU multiply + sublane reduce (no M=1 matmuls) ---
    v2 = jnp.sum(s[:, :, None] * v, axis=1)               # (BB, D)

    # --- v_3 = W(cat(v, v_2.repeat(N,1))) split into two matmuls ---
    Wt = Wt_ref[...]                                       # (2D, WS)
    v_flat = v.reshape(BB * N, D)                          # one big MXU matmul
    x1 = jnp.dot(v_flat, Wt[:D, :],
                 preferred_element_type=jnp.float32)       # (BB*N, WS)
    bias_rows = jnp.dot(v2, Wt[D:, :],
                        preferred_element_type=jnp.float32) + Wb   # (BB, WS)
    v3 = x1.reshape(BB, N, WS) + bias_rows[:, None, :]     # (BB, N, WS)

    # --- gate by word embedding; L2-normalize fused with fc projection ---
    # f = normalize(v3 * w); out = f @ fc_w + fc_b
    #   = rsqrt(max(||g||^2, eps^2)) * sum_j g[..,j]*fcw[j] + fcb   (g = v3*w)
    g = v3 * w[:, None, :]                                 # (BB, N, WS)
    sumsq = jnp.sum(g * g, axis=-1)                        # (BB, N)
    inv_norm = lax.rsqrt(jnp.maximum(sumsq, 1e-24))        # == 1/max(||g||,1e-12)
    raw = jnp.sum(g * fcw, axis=-1)                        # (BB, N)  lane reduce

    out_ref[...] = (raw * inv_norm + fcb).astype(out_ref.dtype)


def _choose_block_batch(B):
    """Problems per grid step.

    Prefer two balanced, 8-row-aligned grid steps when B allows (so v7x's two
    TensorCores both get work via the 'parallel' batch axis); otherwise fall
    back to one coarse step, which is optimal on single-TC v5e/v6e and keeps
    all block windows aligned / full-extent.
    """
    if B >= 16 and B % 16 == 0:
        return B // 2
    return B


def pair_score_batched(v, l, w, W_weight, W_bias, fc_weight, fc_bias,
                       *, block_batch=None):
    """Batched Pallas implementation of PairScore.forward.

    v: (B, N, vis_dim), l: (B, N), w: (B, word_size)
    W_weight: (word_size, 2*vis_dim), W_bias: (word_size,)
    fc_weight: (1, word_size), fc_bias: (1,)
    returns: (B, N) float32
    """
    B, N, D = v.shape
    WS = W_weight.shape[0]

    BB = block_batch if block_batch is not None else _choose_block_batch(B)
    assert B % BB == 0, f"block_batch {BB} must divide batch {B}"
    num_steps = B // BB

    v32 = v.astype(jnp.float32)                          # (B, N, D)
    l32 = l.astype(jnp.float32)                          # (B, N)
    w32 = w.astype(jnp.float32)                          # (B, WS)

    Wt = W_weight.T.astype(jnp.float32)                  # (2D, WS)
    consts = jnp.concatenate(
        [W_bias.reshape(1, WS).astype(jnp.float32),
         fc_weight.reshape(1, WS).astype(jnp.float32),
         jnp.broadcast_to(fc_bias.reshape(1, 1).astype(jnp.float32), (1, WS))],
        axis=0)                                          # (3, WS)

    flops = int(B * (3 * N                 # softmax elementwise
                     + 2 * N * D           # attention pooling
                     + 2 * N * D * WS      # x1 matmul
                     + 2 * D * WS          # bias-row matmul
                     + 6 * N * WS          # v3 add, gate, two lane reduces
                     + 3 * N))             # final scale + bias
    transcendentals = int(B * (2 * N + 1))               # exp, rsqrt, recip
    bytes_accessed = int(4 * (B * (N * D + N + WS + N)
                              + 2 * D * WS + 3 * WS))

    out = pl.pallas_call(
        _pair_score_kernel,
        out_shape=jax.ShapeDtypeStruct((B, N), jnp.float32),
        grid=(num_steps,),
        in_specs=[
            pl.BlockSpec((BB, N, D), lambda b: (b, 0, 0)),   # v : per step
            pl.BlockSpec((BB, N), lambda b: (b, 0)),         # l : per step
            pl.BlockSpec((BB, WS), lambda b: (b, 0)),        # w : per step
            pl.BlockSpec((2 * D, WS), lambda b: (0, 0)),     # W^T : resident
            pl.BlockSpec((3, WS), lambda b: (0, 0)),         # consts: resident
        ],
        out_specs=pl.BlockSpec((BB, N), lambda b: (b, 0)),
        compiler_params=pltpu.CompilerParams(
            dimension_semantics=("parallel",)),
        cost_estimate=pl.CostEstimate(
            flops=flops,
            transcendentals=transcendentals,
            bytes_accessed=bytes_accessed),
    )(v32, l32, w32, Wt, consts)
    return out                                            # (B, N)


def pair_score(v, l, w, W_weight, W_bias, fc_weight, fc_bias):
    """Single-problem wrapper matching the original module signature.

    v: (N, vis_dim), l: (N,), w: (word_size,) -> (N,)
    """
    out = pair_score_batched(v[None], l[None], w[None],
                             W_weight, W_bias, fc_weight, fc_bias)
    return out[0]


def pair_score_ref(v, l, w, W_weight, W_bias, fc_weight, fc_bias):
    """Pure-JAX reference mirroring the PyTorch forward."""
    s = jax.nn.softmax(l, axis=0)
    v2 = s[None, :] @ v                                    # (1, D)
    v3 = jnp.concatenate([v, jnp.tile(v2, (v.shape[0], 1))], axis=1)
    v3 = v3 @ W_weight.T + W_bias
    g = v3 * w[None, :]
    norm = jnp.sqrt(jnp.sum(g * g, axis=1, keepdims=True))
    f = g / jnp.maximum(norm, 1e-12)
    return (f @ fc_weight.T + fc_bias)[:, 0]


if __name__ == "__main__":
    num_bbox, vis_dim, word_size = 8, 32, 32

    key = jax.random.PRNGKey(0)
    kv, kl, kw, kW, kWb, kfc, kfcb = jax.random.split(key, 7)

    # Parameter shapes match nn.Linear(vis_dim*2, word_size) and
    # nn.Linear(word_size, 1).
    W_weight = 0.1 * jax.random.normal(kW, (word_size, 2 * vis_dim),
                                       dtype=jnp.float32)
    W_bias = 0.1 * jax.random.normal(kWb, (word_size,), dtype=jnp.float32)
    fc_weight = 0.1 * jax.random.normal(kfc, (1, word_size), dtype=jnp.float32)
    fc_bias = 0.1 * jax.random.normal(kfcb, (1,), dtype=jnp.float32)

    ref_fn = jax.vmap(
        lambda vv, ll, ww: pair_score_ref(vv, ll, ww, W_weight, W_bias,
                                          fc_weight, fc_bias))

    # ---- small batch (single coarse grid step) ----
    B = 4
    v = jax.random.normal(kv, (B, num_bbox, vis_dim), dtype=jnp.float32)
    l = jax.random.normal(kl, (B, num_bbox), dtype=jnp.float32)
    w = jax.random.normal(kw, (B, word_size), dtype=jnp.float32)

    out_b = pair_score_batched(v, l, w, W_weight, W_bias, fc_weight, fc_bias)
    out_b = jax.block_until_ready(out_b)
    ref_b = ref_fn(v, l, w)
    assert out_b.shape == (B, num_bbox)
    assert jnp.allclose(out_b, ref_b, atol=2e-5, rtol=2e-5), (out_b, ref_b)

    # ---- larger batch (exercises the 2-step, 8-row-aligned blocking) ----
    B2 = 32
    v2 = jax.random.normal(kv, (B2, num_bbox, vis_dim), dtype=jnp.float32)
    l2 = jax.random.normal(kl, (B2, num_bbox), dtype=jnp.float32)
    w2 = jax.random.normal(kw, (B2, word_size), dtype=jnp.float32)

    out_b2 = pair_score_batched(v2, l2, w2, W_weight, W_bias,
                                fc_weight, fc_bias)
    out_b2 = jax.block_until_ready(out_b2)
    ref_b2 = ref_fn(v2, l2, w2)
    assert out_b2.shape == (B2, num_bbox)
    assert jnp.allclose(out_b2, ref_b2, atol=2e-5, rtol=2e-5), (out_b2, ref_b2)

    # ---- single-problem wrapper (original module signature) ----
    out_1 = pair_score(v[0], l[0], w[0], W_weight, W_bias, fc_weight, fc_bias)
    out_1 = jax.block_until_ready(out_1)
    assert out_1.shape == (num_bbox,)
    assert jnp.allclose(out_1, ref_b[0], atol=2e-5, rtol=2e-5), (out_1, ref_b[0])

    print("KERNEL_OK")
</pallas_src>

<mosaic_0001>
module attributes {stable_mosaic.version = 11 : i64} {
  func.func @_pair_score_kernel(%arg0: i32, %arg1: memref<4x8x32xf32, #tpu.memory_space<vmem>>, %arg2: memref<4x8xf32, #tpu.memory_space<vmem>>, %arg3: memref<4x32xf32, #tpu.memory_space<vmem>>, %arg4: memref<64x32xf32, #tpu.memory_space<vmem>>, %arg5: memref<3x32xf32, #tpu.memory_space<vmem>>, %arg6: memref<4x8xf32, #tpu.memory_space<vmem>>) attributes {dimension_semantics = [#tpu.dimension_semantics<parallel>], iteration_bounds = array<i64: 1>, scalar_prefetch = 0 : i64, scratch_operands = 0 : i64, tpu.core_type = #tpu.core_type<tc>, window_params = [{transform_indices = @transform_0, window_bounds = array<i64: 4, 8, 32>}, {transform_indices = @transform_1, window_bounds = array<i64: 4, 8>}, {transform_indices = @transform_2, window_bounds = array<i64: 4, 32>}, {pipeline_mode = #tpu.pipeline_mode<synchronous>, transform_indices = @transform_3, window_bounds = array<i64: 64, 32>}, {pipeline_mode = #tpu.pipeline_mode<synchronous>, transform_indices = @transform_4, window_bounds = array<i64: 3, 32>}, {transform_indices = @transform_5, window_bounds = array<i64: 4, 8>}]} {
    %c0 = arith.constant 0 : index
    %c0_0 = arith.constant 0 : index
    %c0_1 = arith.constant 0 : index
    %0 = vector.load %arg1[%c0, %c0_0, %c0_1] : memref<4x8x32xf32, #tpu.memory_space<vmem>>, vector<4x8x32xf32>
    %c0_2 = arith.constant 0 : index
    %c0_3 = arith.constant 0 : index
    %1 = vector.load %arg2[%c0_2, %c0_3] : memref<4x8xf32, #tpu.memory_space<vmem>>, vector<4x8xf32>
    %c0_4 = arith.constant 0 : index
    %c0_5 = arith.constant 0 : index
    %2 = vector.load %arg3[%c0_4, %c0_5] : memref<4x32xf32, #tpu.memory_space<vmem>>, vector<4x32xf32>
    %c0_6 = arith.constant 0 : index
    %c0_7 = arith.constant 0 : index
    %3 = vector.load %arg5[%c0_6, %c0_7] : memref<3x32xf32, #tpu.memory_space<vmem>>, vector<3x32xf32>
    %4 = vector.extract_strided_slice %3 {offsets = [0, 0], sizes = [1, 32], strides = [1, 1]} : vector<3x32xf32> to vector<1x32xf32>
    %5 = vector.extract_strided_slice %3 {offsets = [1, 0], sizes = [1, 32], strides = [1, 1]} : vector<3x32xf32> to vector<1x32xf32>
    %6 = vector.extract_strided_slice %3 {offsets = [2, 0], sizes = [1, 1], strides = [1, 1]} : vector<3x32xf32> to vector<1x1xf32>
    %cst = arith.constant dense<0xFF800000> : vector<4xf32>
    %7 = vector.multi_reduction <maximumf>, %1, %cst [1] : vector<4x8xf32> to vector<4xf32>
    %8 = vector.shape_cast %7 : vector<4xf32> to vector<4x1xf32>
    %9 = vector.broadcast %8 : vector<4x1xf32> to vector<4x8xf32>
    %10 = arith.subf %1, %9 : vector<4x8xf32>
    %11 = math.exp %10 : vector<4x8xf32>
    %cst_8 = arith.constant dense<0.000000e+00> : vector<4xf32>
    %12 = vector.multi_reduction <add>, %11, %cst_8 [1] : vector<4x8xf32> to vector<4xf32>
    %13 = vector.shape_cast %12 : vector<4xf32> to vector<4x1xf32>
    %14 = tpu.reciprocal %13 : vector<4x1xf32> -> vector<4x1xf32>
    %15 = vector.broadcast %14 : vector<4x1xf32> to vector<4x8xf32>
    %16 = arith.mulf %11, %15 : vector<4x8xf32>
    %17 = vector.shape_cast %16 : vector<4x8xf32> to vector<4x8x1xf32>
    %18 = vector.broadcast %17 : vector<4x8x1xf32> to vector<4x8x32xf32>
    %19 = arith.mulf %18, %0 : vector<4x8x32xf32>
    %cst_9 = arith.constant dense<0.000000e+00> : vector<4x32xf32>
    %20 = vector.multi_reduction <add>, %19, %cst_9 [1] : vector<4x8x32xf32> to vector<4x32xf32>
    %c0_10 = arith.constant 0 : index
    %c0_11 = arith.constant 0 : index
    %21 = vector.load %arg4[%c0_10, %c0_11] : memref<64x32xf32, #tpu.memory_space<vmem>>, vector<64x32xf32>
    %22 = vector.shape_cast %0 : vector<4x8x32xf32> to vector<32x32xf32>
    %23 = vector.extract_strided_slice %21 {offsets = [0, 0], sizes = [32, 32], strides = [1, 1]} : vector<64x32xf32> to vector<32x32xf32>
    %cst_12 = arith.constant dense<0.000000e+00> : vector<32x32xf32>
    %24 = tpu.matmul %22, %23, %cst_12 {dimension_numbers = #tpu.dot_dimension_numbers<[1], [0], [0], [1], [0, 0, 1, 1], [], []>} : vector<32x32xf32>, vector<32x32xf32>, vector<32x32xf32> -> vector<32x32xf32>
    %25 = vector.extract_strided_slice %21 {offsets = [32, 0], sizes = [32, 32], strides = [1, 1]} : vector<64x32xf32> to vector<32x32xf32>
    %cst_13 = arith.constant dense<0.000000e+00> : vector<4x32xf32>
    %26 = tpu.matmul %20, %25, %cst_13 {dimension_numbers = #tpu.dot_dimension_numbers<[1], [0], [0], [1], [0, 0, 1, 1], [], []>} : vector<4x32xf32>, vector<32x32xf32>, vector<4x32xf32> -> vector<4x32xf32>
    %27 = vector.broadcast %4 : vector<1x32xf32> to vector<4x32xf32>
    %28 = arith.addf %26, %27 : vector<4x32xf32>
    %29 = vector.shape_cast %24 : vector<32x32xf32> to vector<4x8x32xf32>
    %30 = vector.shape_cast %28 : vector<4x32xf32> to vector<4x1x32xf32>
    %31 = vector.broadcast %30 : vector<4x1x32xf32> to vector<4x8x32xf32>
    %32 = arith.addf %29, %31 : vector<4x8x32xf32>
    %33 = vector.shape_cast %2 : vector<4x32xf32> to vector<4x1x32xf32>
    %34 = vector.broadcast %33 : vector<4x1x32xf32> to vector<4x8x32xf32>
    %35 = arith.mulf %32, %34 : vector<4x8x32xf32>
    %36 = arith.mulf %35, %35 : vector<4x8x32xf32>
    %cst_14 = arith.constant dense<0.000000e+00> : vector<4x8xf32>
    %37 = vector.multi_reduction <add>, %36, %cst_14 [2] : vector<4x8x32xf32> to vector<4x8xf32>
    %cst_15 = arith.constant 1.000000e-24 : f32
    %38 = vector.broadcast %cst_15 : f32 to vector<4x8xf32>
    %39 = arith.maximumf %37, %38 : vector<4x8xf32>
    %40 = math.rsqrt %39 : vector<4x8xf32>
    %41 = vector.shape_cast %5 : vector<1x32xf32> to vector<1x1x32xf32>
    %42 = vector.broadcast %41 : vector<1x1x32xf32> to vector<4x8x32xf32>
    %43 = arith.mulf %35, %42 : vector<4x8x32xf32>
    %cst_16 = arith.constant dense<0.000000e+00> : vector<4x8xf32>
    %44 = vector.multi_reduction <add>, %43, %cst_16 [2] : vector<4x8x32xf32> to vector<4x8xf32>
    %45 = arith.mulf %44, %40 : vector<4x8xf32>
    %46 = vector.broadcast %6 : vector<1x1xf32> to vector<4x8xf32>
    %47 = arith.addf %45, %46 : vector<4x8xf32>
    %c0_17 = arith.constant 0 : index
    %c0_18 = arith.constant 0 : index
    %48 = vector.load %arg6[%c0_17, %c0_18] : memref<4x8xf32, #tpu.memory_space<vmem>>, vector<4x8xf32>
    tpu.vector_store %arg6[%c0_17, %c0_18], %47 {strides = array<i32>} : memref<4x8xf32, #tpu.memory_space<vmem>>, vector<4x8xf32>,
    return
  }
  func.func @transform_0(%arg0: i32) -> (i32, i32, i32) {
    %c0_i32 = arith.constant 0 : i32
    %c0_i32_0 = arith.constant 0 : i32
    %c0_i32_1 = arith.constant 0 : i32
    return %arg0, %c0_i32, %c0_i32_0 : i32, i32, i32
  }
  func.func @transform_1(%arg0: i32) -> (i32, i32) {
    %c0_i32 = arith.constant 0 : i32
    %c0_i32_0 = arith.constant 0 : i32
    return %arg0, %c0_i32 : i32, i32
  }
  func.func @transform_2(%arg0: i32) -> (i32, i32) {
    %c0_i32 = arith.constant 0 : i32
    %c0_i32_0 = arith.constant 0 : i32
    return %arg0, %c0_i32 : i32, i32
  }
  func.func @transform_3(%arg0: i32) -> (i32, i32) {
    %c0_i32 = arith.constant 0 : i32
    %c0_i32_0 = arith.constant 0 : i32
    %c0_i32_1 = arith.constant 0 : i32
    return %c0_i32, %c0_i32_0 : i32, i32
  }
  func.func @transform_4(%arg0: i32) -> (i32, i32) {
    %c0_i32 = arith.constant 0 : i32
    %c0_i32_0 = arith.constant 0 : i32
    %c0_i32_1 = arith.constant 0 : i32
    return %c0_i32, %c0_i32_0 : i32, i32
  }
  func.func @transform_5(%arg0: i32) -> (i32, i32) {
    %c0_i32 = arith.constant 0 : i32
    %c0_i32_0 = arith.constant 0 : i32
    return %arg0, %c0_i32 : i32, i32
  }
}

</mosaic_0001>

<bundles_post_ra>
// kernel: tpu_custom_call.1
= control target key start
LH: loop header
LB: loop body
LE: loop exit
PB: predicated region body
PF: predicated region fallthrough
CT: control target
= control target key end

     0   :  { %vm28_vm0 = vcmask 60416   ;;  %s706_s0 = inlined_call_operand.vmem [shape: f32[4,8,32], index: 0, kind: input, shape index: {}]   ;;  %s707_s1 = inlined_call_operand.vmem [shape: f32[4,8], index: 1, kind: input, shape index: {}]   ;;  %s708_s2 = inlined_call_operand.vmem [shape: f32[4,32], index: 2, kind: input, shape index: {}]   ;;  %s709_s3 = inlined_call_operand.vmem [shape: f32[64,32], index: 3, kind: input, shape index: {}]   ;;  %s710_s4 = inlined_call_operand.vmem [shape: f32[3,32], index: 4, kind: input, shape index: {}]   ;;  %s711_s5 = inlined_call_operand.hbm [shape: f32[4,8], index: 5, kind: output, shape index: {}]  }
   0x1   :  { %v25_v0 = vld [vmem:[%s707_s1] sm:$0xf] }
   0x2   :  { %10 = vsyncpa [#allocation3], 0  ;;  %v29_v1 = vsel %vm28_vm0, %v25_v0, -inf  ;;  %v40_v8 = vlaneseq  ;;  %vm72_vm1 = vcmask 261120   ;;  %v21_v9 = vld [vmem:[%s706_s0] sm:$0xff]  ;;  %v572_v20 = vmov 0.0  }
   0x3   :  { %30 = vmax.xlane.f32.xlu0 %v29_v1  ;;  %515 = vmatprep.mubr.msk.f32.mxu0 %vm72_vm1, %v21_v9  ;;  %v108_v21 = vld [vmem:[%s709_s3 + $0x38] sm:$0xff]  ;;  %v107_v22 = vld [vmem:[%s709_s3 + $0x30] sm:$0xff]  ;;  %v106_v25 = vld [vmem:[%s709_s3 + $0x28] sm:$0xff]  ;;  %vm573_vm2 = vmmov 0   ;;  %vm214_vm3 = vcmask 1041409   ;;  %vm216_vm4 = vcmask 1042434  }
   0x4   :  { %v616_v10 = vshrl.u32 %v40_v8, 7  ;;  %521 = vmatprep.subr.mxu1 %v572_v20  ;;  %v104_v24 = vld [vmem:[%s709_s3 + $0x18] sm:$0xff]  ;;  %v103_v26 = vld [vmem:[%s709_s3 + $0x10] sm:$0xff]  ;;  %v105_v27 = vld [vmem:[%s709_s3 + $0x20] sm:$0xff]  ;;  %529 = vmatprep.mubr.msk.f32.mxu1 %vm573_vm2, %v572_v20  ;;  %vm218_vm5 = vcmask 1043459  }
   0x5   :  { %522 = vmatpush3.msra.mxu1 %v108_v21  ;;  %507 = vmatprep.subr.mxu0 %v104_v24  ;;  %v102_v28 = vld [vmem:[%s709_s3 + $0x8] sm:$0xff]  ;;  %v101_v29 = vld [vmem:[%s709_s3] sm:$0xff]  ;;  %v23_v31 = vld [vmem:[%s706_s0 + $0x10] sm:$0xff] }
   0x6   :  { %v619_v11 = vsub.s32 0, %v616_v10  ;;  %v56_v12 = vsub.s32 2, %v616_v10  ;;  %v49_v17 = vsub.s32 1, %v616_v10  ;;  %v63_v19 = vsub.s32 3, %v616_v10  ;;  %523 = vmatprep.subr.mxu1 %v572_v20  ;;  %508 = vmatpush3.msra.mxu0 %v104_v24  ;;  %v22_v30 = vld [vmem:[%s706_s0 + $0x8] sm:$0xff]  ;;  %v24_v32 = vld [vmem:[%s706_s0 + $0x18] sm:$0xff] }
   0x7   :  { %524 = vmatpush3.msra.mxu1 %v107_v22  ;;  %509 = vmatprep.subr.mxu0 %v103_v26 }
   0x8   :  { %525 = vmatprep.subr.mxu1 %v572_v20  ;;  %510 = vmatpush3.msra.mxu0 %v103_v26 }
   0x9   :  { %526 = vmatpush3.msra.mxu1 %v106_v25  ;;  %511 = vmatprep.subr.mxu0 %v102_v28 }
   0xa   :  { %527 = vmatprep.subr.mxu1 %v572_v20  ;;  %512 = vmatpush3.msra.mxu0 %v102_v28 }
   0xb   :  { %528 = vmatpush3.msra.mxu1 %v105_v27  ;;  %513 = vmatprep.subr.mxu0 %v101_v29 }
   0xc   :  { %514 = vmatpush3.msra.mxu0 %v101_v29 }
   0xd   :  { %516 = vmatmul.mubr.msk.f32.vlgmr.msra.gmra.mxu0 %vm72_vm1, %v22_v30 }
   0xe   :  { %518 = vmatprep.mubr.msk.f32.mxu0 %vm72_vm1, %v23_v31 }
  0x11   :  { %519 = vmatmul.mubr.msk.f32.gmra.mxu0 %vm72_vm1, %v24_v32 }
  0x8c   :  { %v31_v2 = vpop.xlane.xlu0 %30 }
  0x8d   :  { %v32_v3 = vsub.f32 %v25_v0, %v31_v2 }
  0x8f   :  { %v33_v4 = vmul.f32 1.442695, %v32_v3 }
  0x91   :  { %538 = vpow2.f32 %v33_v4 }
  0x9e   :  { %v539_v5 = vpop.eup %538 }
  0x9f   :  { %v35_v6 = vsel %vm28_vm0, %v539_v5, 0.0 }
  0xa0   :  { %36 = vadd.xlane.f32.xlu0 %v35_v6 }
 0x129   :  { %v37_v7 = vpop.xlane.xlu0 %36 }
 0x12a   :  { %540 = vrcp.f32 %v37_v7 }
 0x137   :  { %v541_v13 = vpop.eup %540 }
 0x138   :  { %v39_v14 = vmul.f32 %v541_v13, %v539_v5  ;;  %v574_v13 = vmov 1966171168  }
 0x13a   :  { %v57_v15 = vrot.slane %v39_v14, %v56_v12  ;;  %v43_v16 = vrot.slane %v39_v14, %v619_v11  ;;  %v50_v18 = vrot.slane %v39_v14, %v49_v17  ;;  %v64_v23 = vrot.slane %v39_v14, %v63_v19 }
 0x13b   :  { %v294_v14 = vunpack.c.l.s4 %v574_v13 }
 0x13c   :  { %59 = vbcast.lane.b32.xlu0 %v57_v15, 256  ;;  %45 = vbcast.lane.b32.xlu1 %v43_v16, 256  ;;  %v493_v16 = vld.sshfl [vmem:[%s708_s2] sm:$0x33 pattern:$0x75316420] }
 0x13d   :  { %v295_v15 = vunpack.c.0.s8 %v294_v14  ;;  %v349_v21 = vcombine.high %v493_v16, %v493_v16 }
 0x13f   :  { %v298_v20 = vsub.s32 %v295_v15, %v616_v10 }
 0x140   :  { %52 = vbcast.lane.b32.xlu1 %v50_v18, 256  ;;  %v517_v18 = vpop.f32.mrf.mxu0 }
 0x141   :  { %v356_v24 = vrot.slane %v493_v16, %v298_v20  ;;  %v363_v27 = vrot.slane %v349_v21, %v298_v20 }
 0x144   :  { %66 = vbcast.lane.b32.xlu1 %v64_v23, 256  ;;  %v187_v23 = vpop.f32.mrf.mxu0 }
 0x146   :  { %v520_v29 = vpop.f32.mrf.mxu0 }
 0x1ae   :  { %v60_v33 = vpop.permute.xlu0 %59  ;;  %v46_v34 = vpop.permute.xlu1 %45 }
 0x1af   :  { %v70_v35 = vmul.f32 %v60_v33, %v23_v31  ;;  %v68_v36 = vmul.f32 %v46_v34, %v21_v9  ;;  %v27_v9 = vld [vmem:[%s710_s4] sm:$0x7]  ;;  %v365_v33 = vcombine.high %v363_v27, %v363_v27  ;;  %s575_s4 = smov [#allocation2]  }
 0x1b0   :  { %v439_v12 = vrot.slane %v27_v9, 2  ;;  %v209_v19 = vrot.slane %v27_v9, %v619_v11  ;;  %s480_s20 = sshll.u32 %s575_s4, 4  ;;  %s481_s20 = int_to_ptr.vmem [resolvable:$true] %s480_s20 }
 0x1b1   :  { %v87_v37 = vsel %vm72_vm1, %v70_v35, 0.0  ;;  %v73_v38 = vsel %vm72_vm1, %v68_v36, 0.0  ;;  %v369_v36 = vrot.slane %v356_v24, %v619_v11  ;;  %s550_s21 = scalar_lea.vmem %s481_s20, 64  ;;  %p555_p1 = scmp.lt.s32.totalorder %s481_s20, %s481_s20 }
 0x1b2   :  { %v88_v39 = vrot.slane %v87_v37, 4  ;;  %v74_v40 = vrot.slane %v73_v38, 4  ;;  %v53_v41 = vpop.permute.xlu1 %52  ;;  %532 = vpush %v439_v12  ;;  %p551_p0 = scmp.ne.s32.totalorder %s481_s20, %s550_s21  ;;  %p556_p2 = scmp.lt.s32.totalorder %s550_s21, %s550_s21 }
 0x1b3   :  { %v69_v42 = vmul.f32 %v53_v41, %v22_v30  ;;  %v364_v30 = vcombine.high %v356_v24, %v356_v24 }
 0x1b4   :  { %v89_v43 = vadd.f32 %v88_v39, %v87_v37  ;;  %v75_v44 = vadd.f32 %v74_v40, %v73_v38  ;;  %v373_v38 = vrot.slane %v363_v27, %v619_v11  ;;  %v197_v39 = vpop.f32.mrf.mxu0  ;;  %p557_p3 = por %p556_p2, %p555_p1 }
 0x1b5   :  { %v80_v45 = vsel %vm72_vm1, %v69_v42, 0.0  ;;  %v377_v40 = vrot.slane %v364_v30, %v619_v11 }
 0x1b6   :  { %v76_v46 = vrot.slane %v75_v44, 2  ;;  %v81_v47 = vrot.slane %v80_v45, 4  ;;  %v67_v48 = vpop.permute.xlu1 %66  ;;  %v90_v49 = vrot.slane %v89_v43, 2  ;;  %p558_p4 = pnand %p557_p3, %p551_p0 }
 0x1b7   :  { %v71_v50 = vmul.f32 %v67_v48, %v24_v32 }
 0x1b8   :  { %v77_v51 = vadd.f32 %v76_v46, %v75_v44  ;;  %v82_v52 = vadd.f32 %v81_v47, %v80_v45  ;;  %v91_v56 = vadd.f32 %v90_v49, %v89_v43  ;;  %v381_v45 = vrot.slane %v365_v33, %v619_v11 }
 0x1b9   :  { %v94_v53 = vsel %vm72_vm1, %v71_v50, 0.0 }
 0x1ba   :  { %v83_v54 = vrot.slane %v82_v52, 2  ;;  %v95_v55 = vrot.slane %v94_v53, 4  ;;  %v78_v57 = vrot.slane %v77_v51, 1  ;;  %v92_v62 = vrot.slane %v91_v56, 1 }
 0x1bc   :  { %v84_v58 = vadd.f32 %v83_v54, %v82_v52  ;;  %v96_v59 = vadd.f32 %v95_v55, %v94_v53  ;;  %v79_v63 = vadd.f32 %v78_v57, %v77_v51  ;;  %v93_v4 = vadd.f32 %v92_v62, %v91_v56 }
 0x1bd   :  { %v417_v54 = vrot.slane %v27_v9, %v49_v17 }
 0x1be   :  { %v85_v60 = vrot.slane %v84_v58, 1  ;;  %v97_v61 = vrot.slane %v96_v59, 2 }
 0x1c0   :  { %v86_v0 = vadd.f32 %v85_v60, %v84_v58  ;;  %v98_v1 = vadd.f32 %v97_v61, %v96_v59 }
 0x1c2   :  { %v99_v2 = vrot.slane %v98_v1, 1  ;;  %v215_v3 = vsel %vm214_vm3, %v86_v0, %v79_v63 }
 0x1c3   :  { %v217_v6 = vsel %vm216_vm4, %v93_v4, %v215_v3 }
 0x1c4   :  { %v100_v5 = vadd.f32 %v99_v2, %v98_v1 }
 0x1c6   :  { %v219_v7 = vsel %vm218_vm5, %v100_v5, %v217_v6 }
 0x1c7   :  { %530 = vmatmul.mubr.msk.f32.vlgmr.msra.gmra.mxu1 %vm72_vm1, %v219_v7 }
 0x1e3   :  { %s533_s2 = spop %532 }
 0x287   :  { %v288_v22 = vpop.f32.mrf.mxu1 }
 0x288   :  { %v289_v25 = vadd.f32 %v288_v22, %v209_v19 }
 0x289   :  { %v531_v26 = vpop.f32.mrf.mxu1 }
 0x28a   :  { %v299_v28 = vrot.slane %v289_v25, %v298_v20 }
 0x28c   :  { %v300_v31 = vcombine.high %v299_v28, %v299_v28  ;;  %v307_v32 = vrot.slane %v299_v28, %v298_v20 }
 0x28e   :  { %v314_v34 = vrot.slane %v300_v31, %v298_v20  ;;  %v320_v35 = vrot.slane %v307_v32, %v619_v11  ;;  %v315_v37 = vcombine.high %v307_v32, %v307_v32  ;;  %v452_v20 = vand.u32 127, %v40_v8 }
 0x290   :  { %v324_v41 = vrot.slane %v314_v34, %v619_v11  ;;  %v337_v42 = vadd.f32 %v320_v35, %v187_v23  ;;  %v316_v43 = vcombine.high %v314_v34, %v314_v34  ;;  %v328_v44 = vrot.slane %v315_v37, %v619_v11 }
 0x291   :  { %v441_v23 = vstv %s533_s2  ;;  %v455_v30 = vsub.s32 %v452_v20, %v616_v10 }
 0x292   :  { %v338_v46 = vadd.f32 %v517_v18, %v324_v41  ;;  %v386_v47 = vmul.f32 %v369_v36, %v337_v42  ;;  %v332_v48 = vrot.slane %v316_v43, %v619_v11  ;;  %v339_v49 = vadd.f32 %v328_v44, %v197_v39 }
 0x294   :  { %v387_v50 = vmul.f32 %v373_v38, %v338_v46  ;;  %v340_v51 = vadd.f32 %v520_v29, %v332_v48  ;;  %v388_v52 = vmul.f32 %v377_v40, %v339_v49  ;;  %v390_v53 = vmul.f32 %v386_v47, %v386_v47 }
 0x295   :  { %v418_v17 = vmul.f32 %v417_v54, %v386_v47 }
 0x296   :  { %v389_v55 = vmul.f32 %v381_v45, %v340_v51  ;;  %v394_v56 = vsel %vm72_vm1, %v390_v53, 0.0  ;;  %v391_v57 = vmul.f32 %v387_v50, %v387_v50  ;;  %v392_v58 = vmul.f32 %v388_v52, %v388_v52 }
 0x297   :  { %395 = vadd.xlane.f32.xlu1 %v394_v56  ;;  %v420_v60 = vmul.f32 %v417_v54, %v388_v52  ;;  %v422_v0 = vsel %vm72_vm1, %v418_v17, 0.0  ;;  %v419_v1 = vmul.f32 %v417_v54, %v387_v50 }
 0x298   :  { %v397_v59 = vsel %vm72_vm1, %v391_v57, 0.0  ;;  %v400_v11 = vsel %vm72_vm1, %v392_v58, 0.0  ;;  %v393_v61 = vmul.f32 %v389_v55, %v389_v55  ;;  %v421_v3 = vmul.f32 %v417_v54, %v389_v55 }
 0x299   :  { %398 = vadd.xlane.f32.xlu0 %v397_v59  ;;  %v428_v62 = vsel %vm72_vm1, %v420_v60, 0.0  ;;  %v425_v2 = vsel %vm72_vm1, %v419_v1, 0.0 }
 0x29a   :  { %v403_v63 = vsel %vm72_vm1, %v393_v61, 0.0  ;;  %v431_v4 = vsel %vm72_vm1, %v421_v3, 0.0 }
 0x29b   :  { %401 = vadd.xlane.f32.xlu1 %v400_v11 }
 0x29d   :  { %429 = vadd.xlane.f32.xlu0 %v428_v62 }
 0x29f   :  { %404 = vadd.xlane.f32.xlu1 %v403_v63 }
 0x2a3   :  { %423 = vadd.xlane.f32.xlu1 %v422_v0 }
 0x2a7   :  { %426 = vadd.xlane.f32.xlu1 %v425_v2 }
 0x2ab   :  { %432 = vadd.xlane.f32.xlu1 %v431_v4 }
 0x320   :  { %v396_v5 = vpop.xlane.xlu1 %395 }
 0x321   :  { %v406_v6 = vmax.f32 %v396_v5, 1e-24 }
 0x322   :  { %v399_v7 = vpop.xlane.xlu0 %398 }
 0x323   :  { %542 = vrsqrt.f32 %v406_v6  ;;  %v407_v9 = vmax.f32 %v399_v7, 1e-24 }
 0x324   :  { %v402_v12 = vpop.xlane.xlu1 %401 }
 0x325   :  { %544 = vrsqrt.f32 %v407_v9  ;;  %v408_v13 = vmax.f32 %v402_v12, 1e-24 }
 0x326   :  { %v430_v26 = vpop.xlane.xlu0 %429 }
 0x327   :  { %546 = vrsqrt.f32 %v408_v13 }
 0x328   :  { %v405_v14 = vpop.xlane.xlu1 %404 }
 0x329   :  { %v409_v15 = vmax.f32 %v405_v14, 1e-24 }
 0x32b   :  { %548 = vrsqrt.f32 %v409_v15 }
 0x32c   :  { %v424_v16 = vpop.xlane.xlu1 %423 }
 0x330   :  { %v543_v18 = vpop.eup %542  ;;  %v427_v22 = vpop.xlane.xlu1 %426 }
 0x331   :  { %v434_v19 = vmul.f32 %v543_v18, %v424_v16 }
 0x332   :  { %v545_v21 = vpop.eup %544 }
 0x333   :  { %v435_v24 = vmul.f32 %v545_v21, %v427_v22  ;;  %v443_v28 = vadd.f32 %v441_v23, %v434_v19 }
 0x334   :  { %v547_v25 = vpop.eup %546  ;;  %v433_v34 = vpop.xlane.xlu1 %432 }
 0x335   :  { %v436_v27 = vmul.f32 %v547_v25, %v430_v26  ;;  %v444_v29 = vadd.f32 %v441_v23, %v435_v24  ;;  %v456_v35 = vrot.slane %v443_v28, %v455_v30 }
 0x337   :  { %v445_v31 = vadd.f32 %v441_v23, %v436_v27  ;;  %v460_v32 = vrot.slane %v444_v29, %v455_v30 }
 0x338   :  { %v549_v33 = vpop.eup %548 }
 0x339   :  { %v437_v36 = vmul.f32 %v549_v33, %v433_v34  ;;  %v464_v37 = vrot.slane %v445_v31, %v455_v30  ;;  %v469_v8 = vsel %vm214_vm3, %v460_v32, %v456_v35 }
 0x33b   :  { %v446_v38 = vadd.f32 %v441_v23, %v437_v36  ;;  %v470_v40 = vsel %vm216_vm4, %v464_v37, %v469_v8 }
 0x33d   :  { %v468_v39 = vrot.slane %v446_v38, %v455_v30 }
 0x33f   :  { %v471_v41 = vsel %vm218_vm5, %v468_v39, %v470_v40 }
 0x340   :  { %473 = vst.msk [vmem:[#allocation2] sm:$0xf] %vm28_vm0, %v471_v41 }
 0x341   :  { %561 = shalt.err (!%p558_p4)
}
 0x342   :  { %483 = dma.vmem_to_hbm [thread:$0]  %s481_s20, 64, %s711_s5, [#allocation3]  }
 0x343   :  { %570 = dma.done.wait [#allocation3], 64  }
 0x344   :  { %571 = vsyncadd [#allocation3], 4294967232 }
 0x345   :  { %487 = vsyncpa [#allocation3], 1 }

</bundles_post_ra>
